<compile_context>
chip_gen: v6e
topology: v6e:2x2x1
jax: 0.10.0
libtpu: 0.0.40
codegen_flags: <defaults>
</compile_context>

<pallas_src>
import math
import jax
import jax.numpy as jnp
from jax.experimental import pallas as pl
from jax.experimental.pallas import tpu as pltpu

_INV_SQRT2 = 1.0 / math.sqrt(2.0)


def resblock_kernel(x_ref, w1t_ref, b1_ref, w2t_ref, b2_ref, o_ref):
    x = x_ref[...].astype(jnp.float32)                       # (TB, D)
    # fc1: (TB, D) @ (D, H) + (1, H)
    h = jnp.dot(x, w1t_ref[...], preferred_element_type=jnp.float32) + b1_ref[...]
    # exact (erf) GELU — matches PyTorch nn.GELU() default
    h = 0.5 * h * (1.0 + jax.lax.erf(h * _INV_SQRT2))
    # fc2: (TB, H) @ (H, D) + (1, D), then residual in f32
    out = jnp.dot(h, w2t_ref[...], preferred_element_type=jnp.float32) + b2_ref[...]
    o_ref[...] = (out + x).astype(o_ref.dtype)


def init_resblock_params(w1, b1, w2, b2):
    """One-time parameter prep (done at load time, NOT per forward call).

    w1: (inter, start), b1: (inter,), w2: (start, inter), b2: (start,)
    Returns weights pre-transposed to (in, out) and biases as (1, out).
    """
    return (
        jnp.transpose(w1),            # (start, inter)
        b1.reshape(1, -1),            # (1, inter)
        jnp.transpose(w2),            # (inter, start)
        b2.reshape(1, -1),            # (1, start)
    )


def resblock_apply(x, params, block_rows=None):
    """x: (B, start_dim); params from init_resblock_params."""
    w1t, b1r, w2t, b2r = params
    B, D = x.shape
    H = w1t.shape[1]

    # Row-tile over the batch: keep whole small batches as one tile, otherwise use
    # 256-row tiles (>=128 rows so per-step overhead is amortized and stores stay dense).
    if block_rows is None:
        block_rows = B if B <= 256 else 256
    if B % block_rows != 0:
        block_rows = B                # fall back to a single tile for odd small batches
    grid = (B // block_rows,)

    itemsize = jnp.dtype(jnp.float32).itemsize
    cost = pl.CostEstimate(
        flops=4 * B * D * H,                                   # two matmuls
        transcendentals=B * H,                                 # erf per hidden element
        bytes_accessed=(B * D * 2 + D * H * 2 + H + D) * itemsize,
    )

    return pl.pallas_call(
        resblock_kernel,
        out_shape=jax.ShapeDtypeStruct((B, D), x.dtype),
        grid=grid,
        in_specs=[
            pl.BlockSpec((block_rows, D), lambda i: (i, 0)),   # x: tiled over batch
            pl.BlockSpec((D, H), lambda i: (0, 0)),            # w1t: VMEM-resident
            pl.BlockSpec((1, H), lambda i: (0, 0)),            # b1
            pl.BlockSpec((H, D), lambda i: (0, 0)),            # w2t: VMEM-resident
            pl.BlockSpec((1, D), lambda i: (0, 0)),            # b2
        ],
        out_specs=pl.BlockSpec((block_rows, D), lambda i: (i, 0)),
        compiler_params=pltpu.CompilerParams(
            dimension_semantics=("parallel",),                 # 2-TC sharding on v7x
        ),
        cost_estimate=cost,
    )(x, w1t, b1r, w2t, b2r)


def resblock_ref(x, w1, b1, w2, b2):
    h = x @ w1.T + b1
    h = 0.5 * h * (1.0 + jax.lax.erf(h / jnp.sqrt(2.0)))
    return h @ w2.T + b2 + x


if __name__ == "__main__":
    # Small shapes consistent with the module: batch=8, start_dim=32, intermediary_dim=64
    B, start_dim, inter_dim = 8, 32, 64

    key = jax.random.PRNGKey(0)
    kx, kw1, kb1, kw2, kb2, kx2 = jax.random.split(key, 6)

    x = jax.random.normal(kx, (B, start_dim), dtype=jnp.float32)

    # Deterministic parameter init (PyTorch Linear shapes: weight (out, in), bias (out,))
    bound1 = 1.0 / math.sqrt(start_dim)
    w1 = jax.random.uniform(kw1, (inter_dim, start_dim), jnp.float32, -bound1, bound1)
    b1 = jax.random.uniform(kb1, (inter_dim,), jnp.float32, -bound1, bound1)
    bound2 = 1.0 / math.sqrt(inter_dim)
    w2 = jax.random.uniform(kw2, (start_dim, inter_dim), jnp.float32, -bound2, bound2)
    b2 = jax.random.uniform(kb2, (start_dim,), jnp.float32, -bound2, bound2)

    # One-time param prep (hoisted out of the forward path).
    params = init_resblock_params(w1, b1, w2, b2)

    # Small-batch path (single tile, grid=(1,)).
    out = jax.block_until_ready(resblock_apply(x, params))
    ref = resblock_ref(x, w1, b1, w2, b2)
    assert out.shape == (B, start_dim)
    assert jnp.allclose(out, ref, atol=1e-5, rtol=1e-5), "mismatch vs reference (small batch)"

    # Larger-batch path exercising the batch grid (grid=(2,), weights stay resident).
    Bbig = 512
    xb = jax.random.normal(kx2, (Bbig, start_dim), dtype=jnp.float32)
    out_b = jax.block_until_ready(resblock_apply(xb, params))
    ref_b = resblock_ref(xb, w1, b1, w2, b2)
    assert out_b.shape == (Bbig, start_dim)
    assert jnp.allclose(out_b, ref_b, atol=1e-5, rtol=1e-5), "mismatch vs reference (batch grid)"

    print("KERNEL_OK")
</pallas_src>

<mosaic_0001>
module attributes {stable_mosaic.version = 11 : i64} {
  func.func @resblock_kernel(%arg0: i32, %arg1: memref<8x32xf32, #tpu.memory_space<vmem>>, %arg2: memref<32x64xf32, #tpu.memory_space<vmem>>, %arg3: memref<1x64xf32, #tpu.memory_space<vmem>>, %arg4: memref<64x32xf32, #tpu.memory_space<vmem>>, %arg5: memref<1x32xf32, #tpu.memory_space<vmem>>, %arg6: memref<8x32xf32, #tpu.memory_space<vmem>>) attributes {dimension_semantics = [#tpu.dimension_semantics<parallel>], iteration_bounds = array<i64: 1>, scalar_prefetch = 0 : i64, scratch_operands = 0 : i64, tpu.core_type = #tpu.core_type<tc>, window_params = [{transform_indices = @transform_0, window_bounds = array<i64: 8, 32>}, {pipeline_mode = #tpu.pipeline_mode<synchronous>, transform_indices = @transform_1, window_bounds = array<i64: 32, 64>}, {pipeline_mode = #tpu.pipeline_mode<synchronous>, transform_indices = @transform_2, window_bounds = array<i64: 1, 64>}, {pipeline_mode = #tpu.pipeline_mode<synchronous>, transform_indices = @transform_3, window_bounds = array<i64: 64, 32>}, {pipeline_mode = #tpu.pipeline_mode<synchronous>, transform_indices = @transform_4, window_bounds = array<i64: 1, 32>}, {transform_indices = @transform_5, window_bounds = array<i64: 8, 32>}]} {
    %c0 = arith.constant 0 : index
    %c0_0 = arith.constant 0 : index
    %0 = vector.load %arg1[%c0, %c0_0] : memref<8x32xf32, #tpu.memory_space<vmem>>, vector<8x32xf32>
    %c0_1 = arith.constant 0 : index
    %c0_2 = arith.constant 0 : index
    %1 = vector.load %arg2[%c0_1, %c0_2] : memref<32x64xf32, #tpu.memory_space<vmem>>, vector<32x64xf32>
    %cst = arith.constant dense<0.000000e+00> : vector<8x64xf32>
    %2 = tpu.matmul %0, %1, %cst {dimension_numbers = #tpu.dot_dimension_numbers<[1], [0], [0], [1], [0, 0, 1, 1], [], []>} : vector<8x32xf32>, vector<32x64xf32>, vector<8x64xf32> -> vector<8x64xf32>
    %c0_3 = arith.constant 0 : index
    %c0_4 = arith.constant 0 : index
    %3 = vector.load %arg3[%c0_3, %c0_4] : memref<1x64xf32, #tpu.memory_space<vmem>>, vector<1x64xf32>
    %4 = vector.broadcast %3 : vector<1x64xf32> to vector<8x64xf32>
    %5 = arith.addf %2, %4 : vector<8x64xf32>
    %cst_5 = arith.constant 5.000000e-01 : f32
    %6 = vector.broadcast %cst_5 : f32 to vector<8x64xf32>
    %7 = arith.mulf %6, %5 : vector<8x64xf32>
    %cst_6 = arith.constant 0.707106769 : f32
    %8 = vector.broadcast %cst_6 : f32 to vector<8x64xf32>
    %9 = arith.mulf %5, %8 : vector<8x64xf32>
    %10 = math.erf %9 : vector<8x64xf32>
    %cst_7 = arith.constant 1.000000e+00 : f32
    %11 = vector.broadcast %cst_7 : f32 to vector<8x64xf32>
    %12 = arith.addf %11, %10 : vector<8x64xf32>
    %13 = arith.mulf %7, %12 : vector<8x64xf32>
    %c0_8 = arith.constant 0 : index
    %c0_9 = arith.constant 0 : index
    %14 = vector.load %arg4[%c0_8, %c0_9] : memref<64x32xf32, #tpu.memory_space<vmem>>, vector<64x32xf32>
    %cst_10 = arith.constant dense<0.000000e+00> : vector<8x32xf32>
    %15 = tpu.matmul %13, %14, %cst_10 {dimension_numbers = #tpu.dot_dimension_numbers<[1], [0], [0], [1], [0, 0, 1, 1], [], []>} : vector<8x64xf32>, vector<64x32xf32>, vector<8x32xf32> -> vector<8x32xf32>
    %c0_11 = arith.constant 0 : index
    %c0_12 = arith.constant 0 : index
    %16 = vector.load %arg5[%c0_11, %c0_12] : memref<1x32xf32, #tpu.memory_space<vmem>>, vector<1x32xf32>
    %17 = vector.broadcast %16 : vector<1x32xf32> to vector<8x32xf32>
    %18 = arith.addf %15, %17 : vector<8x32xf32>
    %19 = arith.addf %18, %0 : vector<8x32xf32>
    %c0_13 = arith.constant 0 : index
    %c0_14 = arith.constant 0 : index
    %20 = vector.load %arg6[%c0_13, %c0_14] : memref<8x32xf32, #tpu.memory_space<vmem>>, vector<8x32xf32>
    tpu.vector_store %arg6[%c0_13, %c0_14], %19 {strides = array<i32>} : memref<8x32xf32, #tpu.memory_space<vmem>>, vector<8x32xf32>,
    return
  }
  func.func @transform_0(%arg0: i32) -> (i32, i32) {
    %c0_i32 = arith.constant 0 : i32
    %c0_i32_0 = arith.constant 0 : i32
    return %arg0, %c0_i32 : i32, i32
  }
  func.func @transform_1(%arg0: i32) -> (i32, i32) {
    %c0_i32 = arith.constant 0 : i32
    %c0_i32_0 = arith.constant 0 : i32
    %c0_i32_1 = arith.constant 0 : i32
    return %c0_i32, %c0_i32_0 : i32, i32
  }
  func.func @transform_2(%arg0: i32) -> (i32, i32) {
    %c0_i32 = arith.constant 0 : i32
    %c0_i32_0 = arith.constant 0 : i32
    %c0_i32_1 = arith.constant 0 : i32
    return %c0_i32, %c0_i32_0 : i32, i32
  }
  func.func @transform_3(%arg0: i32) -> (i32, i32) {
    %c0_i32 = arith.constant 0 : i32
    %c0_i32_0 = arith.constant 0 : i32
    %c0_i32_1 = arith.constant 0 : i32
    return %c0_i32, %c0_i32_0 : i32, i32
  }
  func.func @transform_4(%arg0: i32) -> (i32, i32) {
    %c0_i32 = arith.constant 0 : i32
    %c0_i32_0 = arith.constant 0 : i32
    %c0_i32_1 = arith.constant 0 : i32
    return %c0_i32, %c0_i32_0 : i32, i32
  }
  func.func @transform_5(%arg0: i32) -> (i32, i32) {
    %c0_i32 = arith.constant 0 : i32
    %c0_i32_0 = arith.constant 0 : i32
    return %arg0, %c0_i32 : i32, i32
  }
}

</mosaic_0001>

<bundles_post_ra>
// kernel: tpu_custom_call.1
= control target key start
LH: loop header
LB: loop body
LE: loop exit
PB: predicated region body
PF: predicated region fallthrough
CT: control target
= control target key end

     0   :  { %v292_v1 = vmov 0.0   ;;  %vm293_vm0 = vmmov 0   ;;  %s375_s0 = inlined_call_operand.vmem [shape: f32[8,32], index: 0, kind: input, shape index: {}]   ;;  %s376_s1 = inlined_call_operand.vmem [shape: f32[32,64], index: 1, kind: input, shape index: {}]   ;;  %s377_s2 = inlined_call_operand.vmem [shape: f32[1,64], index: 2, kind: input, shape index: {}]   ;;  %s378_s3 = inlined_call_operand.vmem [shape: f32[64,32], index: 3, kind: input, shape index: {}]   ;;  %s379_s4 = inlined_call_operand.vmem [shape: f32[1,32], index: 4, kind: input, shape index: {}]   ;;  %s380_s5 = inlined_call_operand.hbm [shape: f32[8,32], index: 5, kind: output, shape index: {}]  }
   0x1   :  { %v25_v0 = vld [vmem:[%s376_s1 + $0x18] sm:$0xff]  ;;  %235 = vmatprep.subr.mxu0 %v292_v1  ;;  %v24_v2 = vld [vmem:[%s376_s1 + $0x10] sm:$0xff]  ;;  %243 = vmatprep.mubr.msk.f32.mxu0 %vm293_vm0, %v292_v1 }
   0x2   :  { %236 = vmatpush3.msra.mxu0 %v25_v0  ;;  %246 = vmatprep.subr.mxu1 %v292_v1 }
   0x3   :  { %10 = vsyncpa [#allocation3], 0  ;;  %237 = vmatprep.subr.mxu0 %v292_v1  ;;  %v23_v3 = vld [vmem:[%s376_s1 + $0x8] sm:$0xff]  ;;  %262 = vmatprep.mubr.msk.f32.mxu1 %vm293_vm0, %v292_v1  ;;  %v22_v4 = vld [vmem:[%s376_s1] sm:$0xff]  ;;  %vm33_vm1 = vcmask 261120   ;;  %vm127_vm2 = vcmask 523264  }
   0x4   :  { %238 = vmatpush3.msra.mxu0 %v24_v2  ;;  %v21_v5 = vld [vmem:[%s375_s0] sm:$0xff]  ;;  %v119_v6 = vld [vmem:[%s378_s3 + $0x38] sm:$0xff]  ;;  %v118_v7 = vld [vmem:[%s378_s3 + $0x30] sm:$0xff] }
   0x5   :  { %239 = vmatprep.subr.mxu0 %v292_v1  ;;  %247 = vmatpush3.msra.mxu1 %v119_v6  ;;  %v117_v8 = vld [vmem:[%s378_s3 + $0x28] sm:$0xff]  ;;  %v116_v9 = vld [vmem:[%s378_s3 + $0x20] sm:$0xff]  ;;  %v115_v10 = vld [vmem:[%s378_s3 + $0x18] sm:$0xff] }
   0x6   :  { %240 = vmatpush3.msra.mxu0 %v23_v3  ;;  %248 = vmatprep.subr.mxu1 %v292_v1  ;;  %v114_v11 = vld [vmem:[%s378_s3 + $0x10] sm:$0xff]  ;;  %v113_v12 = vld [vmem:[%s378_s3 + $0x8] sm:$0xff]  ;;  %v112_v13 = vld [vmem:[%s378_s3] sm:$0xff]  ;;  %s294_s3 = smov [#allocation2]  }
   0x7   :  { %241 = vmatprep.subr.mxu0 %v292_v1  ;;  %249 = vmatpush3.msra.mxu1 %v118_v7  ;;  %v217_v14 = vld [vmem:[%s377_s2] ss:$0 sm:$0xff]  ;;  %s209_s21 = sshll.u32 %s294_s3, 4  ;;  %s210_s21 = int_to_ptr.vmem [resolvable:$true] %s209_s21 }
   0x8   :  { %242 = vmatpush3.msra.mxu0 %v22_v4  ;;  %250 = vmatprep.subr.mxu1 %v292_v1  ;;  %v219_v23 = vld [vmem:[%s379_s4] ss:$0 sm:$0xff]  ;;  %s270_s2 = scalar_lea.vmem %s210_s21, 128  ;;  %p275_p1 = scmp.lt.s32.totalorder %s210_s21, %s210_s21 }
   0x9   :  { %244 = vmatmul.mubr.msk.f32.vlgmr.msra.gmra.mxu0 %vm33_vm1, %v21_v5  ;;  %251 = vmatpush3.msra.mxu1 %v117_v8  ;;  %p271_p0 = scmp.ne.s32.totalorder %s210_s21, %s270_s2  ;;  %p276_p2 = scmp.lt.s32.totalorder %s270_s2, %s270_s2 }
   0xa   :  { %252 = vmatprep.subr.mxu1 %v292_v1 }
   0xb   :  { %253 = vmatpush3.msra.mxu1 %v116_v9  ;;  %p277_p3 = por %p276_p2, %p275_p1 }
   0xc   :  { %254 = vmatprep.subr.mxu1 %v292_v1 }
   0xd   :  { %255 = vmatpush3.msra.mxu1 %v115_v10  ;;  %p278_p4 = pnand %p277_p3, %p271_p0 }
   0xe   :  { %256 = vmatprep.subr.mxu1 %v292_v1 }
   0xf   :  { %257 = vmatpush3.msra.mxu1 %v114_v11 }
  0x10   :  { %258 = vmatprep.subr.mxu1 %v292_v1 }
  0x11   :  { %259 = vmatpush3.msra.mxu1 %v113_v12 }
  0x12   :  { %260 = vmatprep.subr.mxu1 %v292_v1 }
  0x13   :  { %261 = vmatpush3.msra.mxu1 %v112_v13 }
  0xc9   :  { %v103_v15 = vpop.f32.mrf.mxu0 }
  0xca   :  { %v104_v16 = vadd.f32 %v217_v14, %v103_v15 }
  0xcb   :  { %v245_v17 = vpop.f32.mrf.mxu0 }
  0xcc   :  { %v108_v18 = vmul.f32 0.70710677, %v104_v16  ;;  %v107_v20 = vmul.f32 0.5, %v104_v16 }
  0xce   :  { %268 = verf.f32 %v108_v18 }
  0xdb   :  { %v269_v19 = vpop.eup %268 }
  0xdc   :  { %v110_v21 = vadd.f32 1.0, %v269_v19 }
  0xde   :  { %v111_v22 = vmul.f32 %v110_v21, %v107_v20 }
  0xe0   :  { %263 = vmatmul.mubr.msk.f32.vlgmr.msra.gmra.mxu1 %vm127_vm2, %v111_v22 }
 0x1a0   :  { %v197_v24 = vpop.f32.mrf.mxu1 }
 0x1a1   :  { %v198_v25 = vadd.f32 %v219_v23, %v197_v24 }
 0x1a2   :  { %v264_v26 = vpop.f32.mrf.mxu1 }
 0x1a3   :  { %v201_v27 = vadd.f32 %v198_v25, %v21_v5 }
 0x1a5   :  { %202 = vst.msk [vmem:[#allocation2] sm:$0xff] %vm33_vm1, %v201_v27 }
 0x1a6   :  { %281 = shalt.err (!%p278_p4)
}
 0x1a7   :  { %212 = dma.vmem_to_hbm [thread:$0]  %s210_s21, 128, %s380_s5, [#allocation3]  }
 0x1a8   :  { %290 = dma.done.wait [#allocation3], 128  }
 0x1a9   :  { %291 = vsyncadd [#allocation3], 4294967168 }
 0x1aa   :  { %216 = vsyncpa [#allocation3], 1 }

</bundles_post_ra>
